<compile_context>
chip_gen: v5e
topology: v5e:2x2
jax: 0.10.0
libtpu: 0.0.40
codegen_flags: <defaults>
</compile_context>

<pallas_src>
import functools
import math

import jax
import jax.numpy as jnp
from jax.experimental import pallas as pl
from jax.experimental.pallas import tpu as pltpu


_SUBLANE = 8
_LANE = 128


# --------------------------------------------------------------------------- #
# helpers
# --------------------------------------------------------------------------- #
def _round_up(n: int, m: int) -> int:
    return ((n + m - 1) // m) * m


def _compute_alpha(upper_bound: float) -> float:
    # Matches ModifiedTanh / ModifiedReLuTanh constructors.
    if upper_bound == 1:
        upper_bound = 0.95
    return 1.0 / (2.0 * upper_bound) * math.log((1.0 + upper_bound) / (1.0 - upper_bound))


def _apply_activation(y, activation: str, approx_sigmoid: bool):
    # NOTE: alpha of the modified_* activations is folded into W2 at
    # prepare_weights time, so only the pure nonlinearity is applied here.
    if activation == "sigmoid":
        if approx_sigmoid:
            # EUP exp + EUP approximate reciprocal: no VALU divide in the epilogue.
            return pl.reciprocal(1.0 + jnp.exp(-y), approx=True)
        return jax.nn.sigmoid(y)
    if activation in ("tanh", "modified_tanh"):
        return jnp.tanh(y)
    if activation == "relu":
        return jnp.maximum(y, 0.0)
    if activation == "modified_relu_tanh":
        return jnp.maximum(jnp.tanh(y), 0.0)
    raise ValueError("Unsupported Activation Function! Only support tanh, sigmoid, "
                     "relu, modified_tanh, modified_relu_tanh")


def _cast_for_mxu(x, h, w_dtype):
    """Cast MXU feeds to the stored weight dtype (no-op for f32 weights)."""
    if x.dtype != w_dtype:
        x = x.astype(w_dtype)
    if h is not None and w_dtype != jnp.float32:
        h = h.astype(w_dtype)          # bf16 MXU feed; accumulation stays f32
    return x, h


# --------------------------------------------------------------------------- #
# kernels
# --------------------------------------------------------------------------- #
def _mlp_kernel(x_ref, w1t_ref, w2t_ref, o_ref, *, activation, approx_sigmoid):
    """Resident-weight path: both full weights live in VMEM, batch streams."""
    w_dtype = w1t_ref.dtype
    x, _ = _cast_for_mxu(x_ref[...], None, w_dtype)
    h = jnp.dot(x, w1t_ref[...], preferred_element_type=jnp.float32)
    _, h = _cast_for_mxu(x, h, w_dtype)          # h stays f32 for f32 weights
    y = jnp.dot(h, w2t_ref[...], preferred_element_type=jnp.float32)
    o_ref[...] = _apply_activation(y, activation, approx_sigmoid).astype(o_ref.dtype)


def _mlp_kernel_htiled(x_ref, w1t_ref, w2t_ref, o_ref, acc_ref, *,
                       activation, approx_sigmoid):
    """H-tiled path: hidden dim streamed, f32 accumulator resident per batch tile."""
    j = pl.program_id(1)

    @pl.when(j == 0)
    def _init():
        acc_ref[...] = jnp.zeros_like(acc_ref)

    w_dtype = w1t_ref.dtype
    x, _ = _cast_for_mxu(x_ref[...], None, w_dtype)
    h = jnp.dot(x, w1t_ref[...], preferred_element_type=jnp.float32)
    _, h = _cast_for_mxu(x, h, w_dtype)
    acc_ref[...] += jnp.dot(h, w2t_ref[...], preferred_element_type=jnp.float32)

    @pl.when(j == pl.num_programs(1) - 1)
    def _store():
        o_ref[...] = _apply_activation(acc_ref[...], activation,
                                       approx_sigmoid).astype(o_ref.dtype)


# --------------------------------------------------------------------------- #
# wrappers
# --------------------------------------------------------------------------- #
def prepare_weights(fc1_weight, fc2_weight, *, activation="sigmoid",
                    upper_bound=0.9, weight_dtype=None):
    """One-time weight prep (outside the hot path).

    fc1_weight: (hidden_unit, num_feature)   -- PyTorch nn.Linear convention
    fc2_weight: (num_feature, hidden_unit)

    Returns (w1t, w2t) in (in, out) layout:
      w1t: (F, H_pad)   w2t: (H_pad, F)
    The hidden dim is zero-padded to a multiple of 128 (exact: padded columns
    contribute 0).  The feature dim is left un-padded so x / out need no
    wrapper copies.  For modified_tanh / modified_relu_tanh, alpha is folded
    into W2 here.  Pass weight_dtype=jnp.bfloat16 for full-rate MXU on v6e/v7x
    (precision tradeoff vs. the PyTorch f32 reference).
    """
    H, F = fc1_weight.shape
    F2, H2 = fc2_weight.shape
    assert (F2, H2) == (F, H), "fc1/fc2 weight shapes are inconsistent"

    H_pad = _round_up(H, _LANE)
    w_dtype = jnp.dtype(weight_dtype) if weight_dtype is not None else fc1_weight.dtype

    fc2_w = fc2_weight
    if activation in ("modified_tanh", "modified_relu_tanh"):
        fc2_w = fc2_w * jnp.asarray(_compute_alpha(upper_bound), fc2_w.dtype)

    w1t = jnp.zeros((F, H_pad), w_dtype).at[:, :H].set(fc1_weight.T.astype(w_dtype))
    w2t = jnp.zeros((H_pad, F), w_dtype).at[:H, :].set(fc2_w.T.astype(w_dtype))
    return w1t, w2t


def nonlinear_mapping_mlp(x, w1t, w2t, *, activation="sigmoid",
                          block_b=256, block_h=512, approx_sigmoid=False,
                          force_h_tiled=False):
    """Pallas forward of NonlinearMappingMLP.

    x:    (B, F) input
    w1t:  (F, H_pad) prepared fc1 weight (see prepare_weights)
    w2t:  (H_pad, F) prepared fc2 weight
    """
    B, F = x.shape
    Fw, H_pad = w1t.shape
    assert Fw == F and w2t.shape == (H_pad, F), "weights do not match x / each other"

    x_itemsize = jnp.dtype(x.dtype).itemsize
    w_itemsize = jnp.dtype(w1t.dtype).itemsize

    # ---- batch tiling: never pad B up to a multiple of TB ------------------
    block_b = max(_SUBLANE, _round_up(block_b, _SUBLANE))
    TB = min(block_b, _round_up(B, _SUBLANE))
    x_in, B_work, sliced = x, B, False
    if B < TB:                                  # degenerate batch: <=7 pad rows
        x_in = jnp.pad(x, ((0, TB - B), (0, 0)))
        B_work, sliced = TB, True
    # >=2 grid steps when there is enough work so v7x megacore can shard.
    if B_work >= 128 and pl.cdiv(B_work, TB) < 2:
        TB = _round_up(pl.cdiv(B_work, 2), _SUBLANE)
    grid_b = pl.cdiv(B_work, TB)

    # ---- per-generation VMEM budget ----------------------------------------
    try:
        vmem_cap = int(pltpu.get_tpu_info().vmem_capacity_bytes)
    except Exception:  # pragma: no cover - conservative default (v7x per-TC)
        vmem_cap = 64 * 1024 * 1024
    vmem_budget = vmem_cap * 3 // 4

    resident_w = 2 * F * H_pad * w_itemsize          # single-buffered weights
    stream_main = 2 * 2 * TB * F * x_itemsize        # x / out tiles, double-buffered
    interm_main = 4 * TB * (H_pad + F)               # f32 h and y
    fits_resident = (resident_w + stream_main + interm_main) <= vmem_budget

    n_trans = 0 if activation == "relu" else B_work * F
    cost = pl.CostEstimate(
        flops=4 * B_work * F * H_pad,
        transcendentals=int(n_trans),
        bytes_accessed=int(x_itemsize * 2 * B_work * F + w_itemsize * 2 * F * H_pad),
    )

    def _vmem_limit(estimate):
        if estimate <= 16 * 1024 * 1024:   # below the smallest scoped default (v5e)
            return None
        return min(int(estimate * 5 // 4), vmem_budget)

    if fits_resident and not force_h_tiled:
        # ---- resident-weight path ------------------------------------------
        kernel = functools.partial(_mlp_kernel, activation=activation,
                                   approx_sigmoid=approx_sigmoid)
        limit = _vmem_limit(resident_w + stream_main + interm_main)

        def build(single_buffer_weights):
            wkw = {"pipeline_mode": pl.Buffered(1)} if single_buffer_weights else {}
            return pl.pallas_call(
                kernel,
                out_shape=jax.ShapeDtypeStruct((B_work, F), x.dtype),
                grid_spec=pltpu.PrefetchScalarGridSpec(
                    num_scalar_prefetch=0,
                    grid=(grid_b,),
                    in_specs=[
                        pl.BlockSpec((TB, F), lambda i: (i, 0)),            # x streams
                        pl.BlockSpec((F, H_pad), lambda i: (0, 0), **wkw),  # w1t resident
                        pl.BlockSpec((H_pad, F), lambda i: (0, 0), **wkw),  # w2t resident
                    ],
                    out_specs=pl.BlockSpec((TB, F), lambda i: (i, 0)),
                ),
                compiler_params=pltpu.CompilerParams(
                    dimension_semantics=("parallel",),   # megacore-shardable on v7x
                    vmem_limit_bytes=limit,
                ),
                cost_estimate=cost,
            )(x_in, w1t, w2t)

        try:
            out = build(True)
        except Exception:
            # Fallback: default double-buffered resident weights.
            out = build(False)
    else:
        # ---- H-tiled fallback (weights too large to keep resident) ----------
        TH = min(_round_up(block_h, _LANE), H_pad)
        while H_pad % TH:          # TH must divide H_pad exactly (zero-padded cols)
            TH -= _LANE
        grid_h = H_pad // TH
        kernel = functools.partial(_mlp_kernel_htiled, activation=activation,
                                   approx_sigmoid=approx_sigmoid)
        est = (2 * 2 * F * TH * w_itemsize          # w1t/w2t tiles, double-buffered
               + 2 * 2 * TB * F * x_itemsize        # x / out tiles
               + 4 * TB * (F + TH))                 # f32 acc + h
        out = pl.pallas_call(
            kernel,
            out_shape=jax.ShapeDtypeStruct((B_work, F), x.dtype),
            grid_spec=pltpu.PrefetchScalarGridSpec(
                num_scalar_prefetch=0,
                grid=(grid_b, grid_h),
                in_specs=[
                    pl.BlockSpec((TB, F), lambda i, j: (i, 0)),   # x: constant over j
                    pl.BlockSpec((F, TH), lambda i, j: (0, j)),   # w1t hidden-tile
                    pl.BlockSpec((TH, F), lambda i, j: (j, 0)),   # w2t hidden-tile
                ],
                out_specs=pl.BlockSpec((TB, F), lambda i, j: (i, 0)),
                scratch_shapes=[pltpu.VMEM((TB, F), jnp.float32)],
            ),
            compiler_params=pltpu.CompilerParams(
                dimension_semantics=("parallel", "arbitrary"),
                vmem_limit_bytes=_vmem_limit(est),
            ),
            cost_estimate=cost,
        )(x_in, w1t, w2t)

    return out[:B] if sliced else out


# --------------------------------------------------------------------------- #
# demo / self-check
# --------------------------------------------------------------------------- #
if __name__ == "__main__":
    key = jax.random.PRNGKey(0)
    kx, k1, k2 = jax.random.split(key, 3)

    B = 8
    F = 174   # num_feature default of the module
    H = 87    # hidden_unit default of the module

    x = jax.random.normal(kx, (B, F), dtype=jnp.float32)

    # Deterministic init mimicking nn.Linear's uniform(-1/sqrt(fan_in), 1/sqrt(fan_in))
    b1 = 1.0 / math.sqrt(F)
    b2 = 1.0 / math.sqrt(H)
    fc1_w = jax.random.uniform(k1, (H, F), jnp.float32, minval=-b1, maxval=b1)
    fc2_w = jax.random.uniform(k2, (F, H), jnp.float32, minval=-b2, maxval=b2)

    y_lin = (x @ fc1_w.T) @ fc2_w.T            # shared linear part of the references

    # 1) default sigmoid, resident-weight path
    w1t, w2t = prepare_weights(fc1_w, fc2_w, activation="sigmoid")
    out = jax.block_until_ready(nonlinear_mapping_mlp(x, w1t, w2t, activation="sigmoid"))
    ref = jax.nn.sigmoid(y_lin)
    assert out.shape == (B, F)
    assert jnp.allclose(out, ref, atol=1e-5, rtol=1e-5), "sigmoid mismatch vs reference"

    # 2) modified_relu_tanh (alpha folded into W2 at prepare time)
    ub = 0.9
    w1t_m, w2t_m = prepare_weights(fc1_w, fc2_w, activation="modified_relu_tanh",
                                   upper_bound=ub)
    out_m = jax.block_until_ready(
        nonlinear_mapping_mlp(x, w1t_m, w2t_m, activation="modified_relu_tanh"))
    alpha = _compute_alpha(ub)
    ref_m = jnp.maximum(jnp.tanh(alpha * y_lin), 0.0)
    assert jnp.allclose(out_m, ref_m, atol=1e-5, rtol=1e-5), "modified_relu_tanh mismatch"

    # 3) exercise the H-tiled fallback path (accumulator over hidden tiles)
    out_h = jax.block_until_ready(
        nonlinear_mapping_mlp(x, w1t, w2t, activation="sigmoid", force_h_tiled=True))
    assert jnp.allclose(out_h, ref, atol=1e-5, rtol=1e-5), "H-tiled path mismatch"

    print("KERNEL_OK")
</pallas_src>

<mosaic_0001>
module attributes {stable_mosaic.version = 11 : i64} {
  func.func @_mlp_kernel(%arg0: i32, %arg1: memref<8x174xf32, #tpu.memory_space<vmem>>, %arg2: memref<174x128xf32, #tpu.memory_space<vmem>>, %arg3: memref<128x174xf32, #tpu.memory_space<vmem>>, %arg4: memref<8x174xf32, #tpu.memory_space<vmem>>) attributes {dimension_semantics = [#tpu.dimension_semantics<parallel>], iteration_bounds = array<i64: 1>, scalar_prefetch = 0 : i64, scratch_operands = 0 : i64, tpu.core_type = #tpu.core_type<tc>, window_params = [{transform_indices = @transform_0, window_bounds = array<i64: 8, 174>}, {pipeline_mode = #tpu.pipeline_mode<synchronous>, transform_indices = @transform_1, window_bounds = array<i64: 174, 128>}, {pipeline_mode = #tpu.pipeline_mode<synchronous>, transform_indices = @transform_2, window_bounds = array<i64: 128, 174>}, {transform_indices = @transform_3, window_bounds = array<i64: 8, 174>}]} {
    %c0 = arith.constant 0 : index
    %c0_0 = arith.constant 0 : index
    %0 = vector.load %arg1[%c0, %c0_0] : memref<8x174xf32, #tpu.memory_space<vmem>>, vector<8x174xf32>
    %c0_1 = arith.constant 0 : index
    %c0_2 = arith.constant 0 : index
    %1 = vector.load %arg2[%c0_1, %c0_2] : memref<174x128xf32, #tpu.memory_space<vmem>>, vector<174x128xf32>
    %cst = arith.constant dense<0.000000e+00> : vector<8x128xf32>
    %2 = tpu.matmul %0, %1, %cst {dimension_numbers = #tpu.dot_dimension_numbers<[1], [0], [0], [1], [0, 0, 1, 1], [], []>} : vector<8x174xf32>, vector<174x128xf32>, vector<8x128xf32> -> vector<8x128xf32>
    %c0_3 = arith.constant 0 : index
    %c0_4 = arith.constant 0 : index
    %3 = vector.load %arg3[%c0_3, %c0_4] : memref<128x174xf32, #tpu.memory_space<vmem>>, vector<128x174xf32>
    %cst_5 = arith.constant dense<0.000000e+00> : vector<8x174xf32>
    %4 = tpu.matmul %2, %3, %cst_5 {dimension_numbers = #tpu.dot_dimension_numbers<[1], [0], [0], [1], [0, 0, 1, 1], [], []>} : vector<8x128xf32>, vector<128x174xf32>, vector<8x174xf32> -> vector<8x174xf32>
    %5 = arith.negf %4 : vector<8x174xf32>
    %6 = math.exp %5 : vector<8x174xf32>
    %cst_6 = arith.constant 1.000000e+00 : f32
    %7 = vector.broadcast %cst_6 : f32 to vector<8x174xf32>
    %8 = arith.addf %7, %6 : vector<8x174xf32>
    %9 = arith.divf %7, %8 : vector<8x174xf32>
    %c0_7 = arith.constant 0 : index
    %c0_8 = arith.constant 0 : index
    %10 = vector.load %arg4[%c0_7, %c0_8] : memref<8x174xf32, #tpu.memory_space<vmem>>, vector<8x174xf32>
    tpu.vector_store %arg4[%c0_7, %c0_8], %9 {strides = array<i32>} : memref<8x174xf32, #tpu.memory_space<vmem>>, vector<8x174xf32>,
    return
  }
  func.func @transform_0(%arg0: i32) -> (i32, i32) {
    %c0_i32 = arith.constant 0 : i32
    %c0_i32_0 = arith.constant 0 : i32
    return %arg0, %c0_i32 : i32, i32
  }
  func.func @transform_1(%arg0: i32) -> (i32, i32) {
    %c0_i32 = arith.constant 0 : i32
    %c0_i32_0 = arith.constant 0 : i32
    %c0_i32_1 = arith.constant 0 : i32
    return %c0_i32, %c0_i32_0 : i32, i32
  }
  func.func @transform_2(%arg0: i32) -> (i32, i32) {
    %c0_i32 = arith.constant 0 : i32
    %c0_i32_0 = arith.constant 0 : i32
    %c0_i32_1 = arith.constant 0 : i32
    return %c0_i32, %c0_i32_0 : i32, i32
  }
  func.func @transform_3(%arg0: i32) -> (i32, i32) {
    %c0_i32 = arith.constant 0 : i32
    %c0_i32_0 = arith.constant 0 : i32
    return %arg0, %c0_i32 : i32, i32
  }
}

module attributes {stable_mosaic.version = 11 : i64} {
  func.func @_mlp_kernel(%arg0: i32, %arg1: memref<8x174xf32, #tpu.memory_space<vmem>>, %arg2: memref<174x128xf32, #tpu.memory_space<vmem>>, %arg3: memref<128x174xf32, #tpu.memory_space<vmem>>, %arg4: memref<8x174xf32, #tpu.memory_space<vmem>>) attributes {dimension_semantics = [#tpu.dimension_semantics<parallel>], iteration_bounds = array<i64: 1>, scalar_prefetch = 0 : i64, scratch_operands = 0 : i64, tpu.core_type = #tpu.core_type<tc>, window_params = [{transform_indices = @transform_0, window_bounds = array<i64: 8, 174>}, {pipeline_mode = #tpu.pipeline_mode<synchronous>, transform_indices = @transform_1, window_bounds = array<i64: 174, 128>}, {pipeline_mode = #tpu.pipeline_mode<synchronous>, transform_indices = @transform_2, window_bounds = array<i64: 128, 174>}, {transform_indices = @transform_3, window_bounds = array<i64: 8, 174>}]} {
    %c0 = arith.constant 0 : index
    %c0_0 = arith.constant 0 : index
    %0 = vector.load %arg1[%c0, %c0_0] : memref<8x174xf32, #tpu.memory_space<vmem>>, vector<8x174xf32>
    %c0_1 = arith.constant 0 : index
    %c0_2 = arith.constant 0 : index
    %1 = vector.load %arg2[%c0_1, %c0_2] : memref<174x128xf32, #tpu.memory_space<vmem>>, vector<174x128xf32>
    %cst = arith.constant dense<0.000000e+00> : vector<8x128xf32>
    %2 = tpu.matmul %0, %1, %cst {dimension_numbers = #tpu.dot_dimension_numbers<[1], [0], [0], [1], [0, 0, 1, 1], [], []>} : vector<8x174xf32>, vector<174x128xf32>, vector<8x128xf32> -> vector<8x128xf32>
    %c0_3 = arith.constant 0 : index
    %c0_4 = arith.constant 0 : index
    %3 = vector.load %arg3[%c0_3, %c0_4] : memref<128x174xf32, #tpu.memory_space<vmem>>, vector<128x174xf32>
    %cst_5 = arith.constant dense<0.000000e+00> : vector<8x174xf32>
    %4 = tpu.matmul %2, %3, %cst_5 {dimension_numbers = #tpu.dot_dimension_numbers<[1], [0], [0], [1], [0, 0, 1, 1], [], []>} : vector<8x128xf32>, vector<128x174xf32>, vector<8x174xf32> -> vector<8x174xf32>
    %5 = arith.negf %4 : vector<8x174xf32>
    %6 = math.exp %5 : vector<8x174xf32>
    %cst_6 = arith.constant 1.000000e+00 : f32
    %7 = vector.broadcast %cst_6 : f32 to vector<8x174xf32>
    %8 = arith.addf %7, %6 : vector<8x174xf32>
    %9 = arith.divf %7, %8 : vector<8x174xf32>
    %c0_7 = arith.constant 0 : index
    %c0_8 = arith.constant 0 : index
    %10 = vector.load %arg4[%c0_7, %c0_8] : memref<8x174xf32, #tpu.memory_space<vmem>>, vector<8x174xf32>
    tpu.vector_store %arg4[%c0_7, %c0_8], %9 {strides = array<i32>} : memref<8x174xf32, #tpu.memory_space<vmem>>, vector<8x174xf32>,
    return
  }
  func.func @transform_0(%arg0: i32) -> (i32, i32) {
    %c0_i32 = arith.constant 0 : i32
    %c0_i32_0 = arith.constant 0 : i32
    return %arg0, %c0_i32 : i32, i32
  }
  func.func @transform_1(%arg0: i32) -> (i32, i32) {
    %c0_i32 = arith.constant 0 : i32
    %c0_i32_0 = arith.constant 0 : i32
    %c0_i32_1 = arith.constant 0 : i32
    return %c0_i32, %c0_i32_0 : i32, i32
  }
  func.func @transform_2(%arg0: i32) -> (i32, i32) {
    %c0_i32 = arith.constant 0 : i32
    %c0_i32_0 = arith.constant 0 : i32
    %c0_i32_1 = arith.constant 0 : i32
    return %c0_i32, %c0_i32_0 : i32, i32
  }
  func.func @transform_3(%arg0: i32) -> (i32, i32) {
    %c0_i32 = arith.constant 0 : i32
    %c0_i32_0 = arith.constant 0 : i32
    return %arg0, %c0_i32 : i32, i32
  }
}

</mosaic_0001>

<bundles_post_ra>
// kernel: tpu_custom_call.1
= control target key start
LH: loop header
LB: loop body
LE: loop exit
PB: predicated region body
PF: predicated region fallthrough
CT: control target
= control target key end

     0   :  { %vm43_vm0 = vcmask 1045504   ;;  %vm39_vm1 = vcmask 375808   ;;  %s448_s0 = inlined_call_operand.vmem [shape: f32[8,174], index: 0, kind: input, shape index: {}]   ;;  %s449_s1 = inlined_call_operand.vmem [shape: f32[174,128], index: 1, kind: input, shape index: {}]   ;;  %s450_s2 = inlined_call_operand.vmem [shape: f32[128,174], index: 2, kind: input, shape index: {}]   ;;  %s451_s3 = inlined_call_operand.hbm [shape: f32[8,174], index: 3, kind: output, shape index: {}]  }
   0x1   :  { %v32_v0 = vld [vmem:[%s449_s1 + $0x78] sm:$0xff]  ;;  %v31_v1 = vld [vmem:[%s449_s1 + $0x70] sm:$0xff]  ;;  %v30_v2 = vld [vmem:[%s449_s1 + $0x68] sm:$0xff] }
   0x2   :  { %47 = vmatpush.msra.mxu0 %v32_v0  ;;  %v38_v3 = vld [vmem:[%s449_s1 + $0xa8] sm:$0x3f]  ;;  %v29_v4 = vld [vmem:[%s449_s1 + $0x60] sm:$0xff]  ;;  %v36_v6 = vld [vmem:[%s449_s1 + $0x98] sm:$0xff] }
   0x3   :  { %215 = vmatpush.msk.msra.mxu1 %vm43_vm0, %v38_v3  ;;  %v37_v5 = vld [vmem:[%s449_s1 + $0xa0] sm:$0xff]  ;;  %v28_v7 = vld [vmem:[%s449_s1 + $0x58] sm:$0xff]  ;;  %v27_v8 = vld [vmem:[%s449_s1 + $0x50] sm:$0xff] }
   0x4   :  { %48 = vmatpush.msra.mxu0 %v31_v1  ;;  %v35_v9 = vld [vmem:[%s449_s1 + $0x90] sm:$0xff]  ;;  %v118_v11 = vld [vmem:[%s450_s2 + $0xf8] sm:$0xff]  ;;  %v115_v12 = vld [vmem:[%s450_s2 + $0xe0] sm:$0xff] }
   0x5   :  { %78 = vmatpush.msra.mxu1 %v37_v5  ;;  %v117_v10 = vld [vmem:[%s450_s2 + $0xf0] sm:$0xff]  ;;  %v34_v13 = vld [vmem:[%s449_s1 + $0x88] sm:$0xff]  ;;  %139 = vmatpush.msra.mxu3 %v118_v11  ;;  %v33_v17 = vld [vmem:[%s449_s1 + $0x80] sm:$0xff] }
   0x6   :  { %49 = vmatpush.msra.mxu0 %v30_v2  ;;  %119 = vmatpush.msra.mxu2 %v117_v10  ;;  %v116_v14 = vld [vmem:[%s450_s2 + $0xe8] sm:$0xff]  ;;  %v113_v16 = vld [vmem:[%s450_s2 + $0xd0] sm:$0xff]  ;;  %v114_v18 = vld [vmem:[%s450_s2 + $0xd8] sm:$0xff] }
   0x7   :  { %79 = vmatpush.msra.mxu1 %v36_v6  ;;  %v26_v15 = vld [vmem:[%s449_s1 + $0x48] sm:$0xff]  ;;  %v25_v19 = vld [vmem:[%s449_s1 + $0x40] sm:$0xff]  ;;  %140 = vmatpush.msra.mxu3 %v116_v14  ;;  %v24_v23 = vld [vmem:[%s449_s1 + $0x38] sm:$0xff] }
   0x8   :  { %50 = vmatpush.msra.mxu0 %v29_v4  ;;  %120 = vmatpush.msra.mxu2 %v115_v12  ;;  %v16_v20 = vld [vmem:[%s448_s0 + $0x8] sm:$0xff]  ;;  %v111_v21 = vld [vmem:[%s450_s2 + $0xc0] sm:$0xff]  ;;  %v109_v24 = vld [vmem:[%s450_s2 + $0xb0] sm:$0xff] }
   0x9   :  { %80 = vmatpush.msra.mxu1 %v35_v9  ;;  %v112_v22 = vld [vmem:[%s450_s2 + $0xc8] sm:$0xff]  ;;  %141 = vmatpush.msra.mxu3 %v114_v18  ;;  %v110_v25 = vld [vmem:[%s450_s2 + $0xb8] sm:$0xff]  ;;  %v23_v26 = vld [vmem:[%s449_s1 + $0x30] sm:$0xff] }
   0xa   :  { %51 = vmatpush.msra.mxu0 %v28_v7  ;;  %121 = vmatpush.msra.mxu2 %v113_v16  ;;  %v107_v27 = vld [vmem:[%s450_s2 + $0xa0] sm:$0xff]  ;;  %v108_v28 = vld [vmem:[%s450_s2 + $0xa8] sm:$0xff] }
   0xb   :  { %81 = vmatpush.msra.mxu1 %v34_v13  ;;  %142 = vmatpush.msra.mxu3 %v112_v22 }
   0xc   :  { %52 = vmatpush.msra.mxu0 %v27_v8  ;;  %122 = vmatpush.msra.mxu2 %v111_v21 }
   0xd   :  { %82 = vmatpush.msra.mxu1 %v33_v17 }
   0xe   :  { %53 = vmatpush.msra.mxu0 %v26_v15  ;;  %216 = vmatmul.msk.f32.vlgmr.msra.gmra.mxu1 %vm39_vm1, %v16_v20 }
  0x10   :  { %54 = vmatpush.msra.mxu0 %v25_v19 }
  0x12   :  { %55 = vmatpush.msra.mxu0 %v24_v23 }
  0x13   :  { %8 = vsyncpa [#allocation3], 0  ;;  %v22_v29 = vld [vmem:[%s449_s1 + $0x28] sm:$0xff]  ;;  %123 = vmatpush.msra.mxu2 %v109_v24  ;;  %143 = vmatpush.msra.mxu3 %v110_v25  ;;  %v105_v30 = vld [vmem:[%s450_s2 + $0x90] sm:$0xff]  ;;  %s206_s17 = sshll.u32 %s451_s3, 4  ;;  %s207_s17 = int_to_ptr.hbm [resolvable:$true] %s206_s17 }
  0x14   :  { %56 = vmatpush.msra.mxu0 %v23_v26  ;;  %v106_v31 = vld [vmem:[%s450_s2 + $0x98] sm:$0xff]  ;;  %v21_v32 = vld [vmem:[%s449_s1 + $0x20] sm:$0xff]  ;;  %v104_v34 = vld [vmem:[%s450_s2 + $0x88] sm:$0xff] }
  0x15   :  { %124 = vmatpush.msra.mxu2 %v107_v27  ;;  %144 = vmatpush.msra.mxu3 %v108_v28  ;;  %v103_v33 = vld [vmem:[%s450_s2 + $0x80] sm:$0xff]  ;;  %v20_v35 = vld [vmem:[%s449_s1 + $0x18] sm:$0xff]  ;;  %v101_v36 = vld [vmem:[%s450_s2 + $0x70] sm:$0xff] }
  0x16   :  { %57 = vmatpush.msra.mxu0 %v22_v29  ;;  %v102_v37 = vld [vmem:[%s450_s2 + $0x78] sm:$0xff]  ;;  %v19_v38 = vld [vmem:[%s449_s1 + $0x10] sm:$0xff]  ;;  %v99_v39 = vld [vmem:[%s450_s2 + $0x60] sm:$0xff] }
  0x17   :  { %125 = vmatpush.msra.mxu2 %v105_v30  ;;  %145 = vmatpush.msra.mxu3 %v106_v31  ;;  %v100_v40 = vld [vmem:[%s450_s2 + $0x68] sm:$0xff]  ;;  %v97_v42 = vld [vmem:[%s450_s2 + $0x50] sm:$0xff]  ;;  %v98_v43 = vld [vmem:[%s450_s2 + $0x58] sm:$0xff] }
  0x18   :  { %58 = vmatpush.msra.mxu0 %v21_v32  ;;  %v18_v41 = vld [vmem:[%s449_s1 + $0x8] sm:$0xff]  ;;  %v17_v44 = vld [vmem:[%s449_s1] sm:$0xff]  ;;  %v93_v48 = vld [vmem:[%s450_s2 + $0x30] sm:$0xff] }
  0x19   :  { %126 = vmatpush.msra.mxu2 %v103_v33  ;;  %146 = vmatpush.msra.mxu3 %v104_v34  ;;  %v15_v45 = vld [vmem:[%s448_s0] sm:$0xff]  ;;  %v96_v47 = vld [vmem:[%s450_s2 + $0x48] sm:$0xff]  ;;  %v94_v49 = vld [vmem:[%s450_s2 + $0x38] sm:$0xff] }
  0x1a   :  { %59 = vmatpush.msra.mxu0 %v20_v35  ;;  %v95_v46 = vld [vmem:[%s450_s2 + $0x40] sm:$0xff]  ;;  %v92_v51 = vld [vmem:[%s450_s2 + $0x28] sm:$0xff]  ;;  %v89_v52 = vld [vmem:[%s450_s2 + $0x10] sm:$0xff] }
  0x1b   :  { %127 = vmatpush.msra.mxu2 %v101_v36  ;;  %147 = vmatpush.msra.mxu3 %v102_v37  ;;  %v91_v50 = vld [vmem:[%s450_s2 + $0x20] sm:$0xff]  ;;  %v90_v53 = vld [vmem:[%s450_s2 + $0x18] sm:$0xff]  ;;  %v88_v55 = vld [vmem:[%s450_s2 + $0x8] sm:$0xff] }
  0x1c   :  { %60 = vmatpush.msra.mxu0 %v19_v38  ;;  %v87_v54 = vld [vmem:[%s450_s2] sm:$0xff]  ;;  %s254_s2 = smov [#allocation2]  }
  0x1d   :  { %128 = vmatpush.msra.mxu2 %v99_v39  ;;  %148 = vmatpush.msra.mxu3 %v100_v40  ;;  %s204_s14 = sshll.u32 %s254_s2, 4  ;;  %s205_s14 = int_to_ptr.vmem [resolvable:$true] %s204_s14 }
  0x1e   :  { %61 = vmatpush.msra.mxu0 %v18_v41 }
  0x1f   :  { %129 = vmatpush.msra.mxu2 %v97_v42  ;;  %149 = vmatpush.msra.mxu3 %v98_v43 }
  0x20   :  { %62 = vmatpush.msra.mxu0 %v17_v44 }
  0x21   :  { %63 = vmatmul.f32.vlgmr.msra.gmra.mxu0 %v15_v45  ;;  %130 = vmatpush.msra.mxu2 %v95_v46 }
  0x22   :  { %150 = vmatpush.msra.mxu3 %v96_v47 }
  0x23   :  { %131 = vmatpush.msra.mxu2 %v93_v48 }
  0x24   :  { %151 = vmatpush.msra.mxu3 %v94_v49 }
  0x25   :  { %132 = vmatpush.msra.mxu2 %v91_v50 }
  0x26   :  { %152 = vmatpush.msra.mxu3 %v92_v51 }
  0x27   :  { %133 = vmatpush.msra.mxu2 %v89_v52 }
  0x28   :  { %153 = vmatpush.msra.mxu3 %v90_v53 }
  0x29   :  { %134 = vmatpush.msra.mxu2 %v87_v54 }
  0x2a   :  { %154 = vmatpush.msra.mxu3 %v88_v55 }
  0x8b   :  { %v84_v56 = vpop.f32.mrf.mxu1 }
  0x9e   :  { %v64_v57 = vpop.f32.mrf.mxu0 }
  0x9f   :  { %v85_v58 = vadd.f32 %v84_v56, %v64_v57 }
  0xa1   :  { %135 = vmatmul.f32.vlgmr.msra.gmra.mxu2 %v85_v58  ;;  %155 = vmatmul.f32.vlgmr.msra.gmra.mxu3 %v85_v58 }
 0x124   :  { %v136_v59 = vpop.f32.mrf.mxu2  ;;  %v156_v60 = vpop.f32.mrf.mxu3 }
 0x125   :  { %v217_v61 = vmul.f32 -1.442695, %v136_v59  ;;  %v218_v62 = vmul.f32 -1.442695, %v156_v60 }
 0x127   :  { %220 = vpow2.f32 %v217_v61 }
 0x128   :  { %222 = vpow2.f32 %v218_v62 }
 0x12d   :  { %v221_v63 = vpop.eup %220 }
 0x12e   :  { %v223_v0 = vpop.eup %222  ;;  %v165_v1 = vadd.f32 1.0, %v221_v63 }
 0x12f   :  { %v166_v2 = vadd.f32 1.0, %v223_v0 }
 0x130   :  { %224 = vrcp.f32 %v165_v1  ;;  %v178_v9 = vand.u32 2147483648, %v165_v1  ;;  %v176_v11 = vand.u32 2147483647, %v165_v1  ;;  %vm172_vm4 = vweird.f32 %v165_v1 }
 0x131   :  { %226 = vrcp.f32 %v166_v2  ;;  %v193_v12 = vand.u32 2147483648, %v166_v2  ;;  %v191_v14 = vand.u32 2147483647, %v166_v2  ;;  %vm187_vm6 = vweird.f32 %v166_v2 }
 0x132   :  { %v179_v16 = vor.u32 1.1754944e-38, %v178_v9  ;;  %vm177_vm7 = vcmp.eq.f32.partialorder %v176_v11, 8.507059e+37 }
 0x133   :  { %v194_v19 = vor.u32 1.1754944e-38, %v193_v12  ;;  %vm192_vm9 = vcmp.eq.f32.partialorder %v191_v14, 8.507059e+37 }
 0x136   :  { %v225_v3 = vpop.eup %224 }
 0x137   :  { %v227_v4 = vpop.eup %226  ;;  %v168_v5 = vmul.f32 %v225_v3, %v165_v1  ;;  %vm173_vm2 = vweird.f32 %v225_v3 }
 0x138   :  { %v183_v6 = vmul.f32 %v227_v4, %v166_v2  ;;  %vm188_vm3 = vweird.f32 %v227_v4  ;;  %vm174_vm5 = vmor %vm172_vm4, %vm173_vm2 }
 0x139   :  { %v169_v7 = vsub.f32 1.0, %v168_v5  ;;  %vm189_vm8 = vmor %vm187_vm6, %vm188_vm3 }
 0x13a   :  { %v184_v8 = vsub.f32 1.0, %v183_v6 }
 0x13b   :  { %v170_v10 = vmul.f32 %v225_v3, %v169_v7 }
 0x13c   :  { %v185_v13 = vmul.f32 %v227_v4, %v184_v8 }
 0x13d   :  { %v171_v15 = vadd.f32 %v225_v3, %v170_v10 }
 0x13e   :  { %v186_v17 = vadd.f32 %v227_v4, %v185_v13 }
 0x13f   :  { %v175_v18 = vsel %vm174_vm5, %v225_v3, %v171_v15 }
 0x140   :  { %v180_v20 = vsel %vm177_vm7, %v179_v16, %v175_v18  ;;  %v190_v21 = vsel %vm189_vm8, %v227_v4, %v186_v17 }
 0x141   :  { %v195_v22 = vsel %vm192_vm9, %v194_v19, %v190_v21  ;;  %197 = vst [vmem:[#allocation2] sm:$0xff] %v180_v20 }
 0x142   :  { %198 = vst.msk [vmem:[#allocation2 + $0x8] sm:$0xff] %vm39_vm1, %v195_v22 }
 0x143   :  { %209 = dma.vmem_to_hbm [thread:$0]  %s205_s14, 256, %s207_s17, [#allocation3]  }
 0x144   :  { %252 = dma.done.wait [#allocation3], 256  }
 0x145   :  { %253 = vsyncadd [#allocation3], 4294967040 }
 0x146   :  { %214 = vsyncpa [#allocation3], 1 }

// kernel: tpu_custom_call.1
= control target key start
LH: loop header
LB: loop body
LE: loop exit
PB: predicated region body
PF: predicated region fallthrough
CT: control target
= control target key end

     0   :  { %vm43_vm0 = vcmask 1045504   ;;  %vm39_vm1 = vcmask 375808   ;;  %s448_s0 = inlined_call_operand.vmem [shape: f32[8,174], index: 0, kind: input, shape index: {}]   ;;  %s449_s1 = inlined_call_operand.vmem [shape: f32[174,128], index: 1, kind: input, shape index: {}]   ;;  %s450_s2 = inlined_call_operand.vmem [shape: f32[128,174], index: 2, kind: input, shape index: {}]   ;;  %s451_s3 = inlined_call_operand.hbm [shape: f32[8,174], index: 3, kind: output, shape index: {}]  }
   0x1   :  { %v32_v0 = vld [vmem:[%s449_s1 + $0x78] sm:$0xff]  ;;  %v31_v1 = vld [vmem:[%s449_s1 + $0x70] sm:$0xff]  ;;  %v30_v2 = vld [vmem:[%s449_s1 + $0x68] sm:$0xff] }
   0x2   :  { %47 = vmatpush.msra.mxu0 %v32_v0  ;;  %v38_v3 = vld [vmem:[%s449_s1 + $0xa8] sm:$0x3f]  ;;  %v29_v4 = vld [vmem:[%s449_s1 + $0x60] sm:$0xff]  ;;  %v36_v6 = vld [vmem:[%s449_s1 + $0x98] sm:$0xff] }
   0x3   :  { %215 = vmatpush.msk.msra.mxu1 %vm43_vm0, %v38_v3  ;;  %v37_v5 = vld [vmem:[%s449_s1 + $0xa0] sm:$0xff]  ;;  %v28_v7 = vld [vmem:[%s449_s1 + $0x58] sm:$0xff]  ;;  %v27_v8 = vld [vmem:[%s449_s1 + $0x50] sm:$0xff] }
   0x4   :  { %48 = vmatpush.msra.mxu0 %v31_v1  ;;  %v35_v9 = vld [vmem:[%s449_s1 + $0x90] sm:$0xff]  ;;  %v118_v11 = vld [vmem:[%s450_s2 + $0xf8] sm:$0xff]  ;;  %v115_v12 = vld [vmem:[%s450_s2 + $0xe0] sm:$0xff] }
   0x5   :  { %78 = vmatpush.msra.mxu1 %v37_v5  ;;  %v117_v10 = vld [vmem:[%s450_s2 + $0xf0] sm:$0xff]  ;;  %v34_v13 = vld [vmem:[%s449_s1 + $0x88] sm:$0xff]  ;;  %139 = vmatpush.msra.mxu3 %v118_v11  ;;  %v33_v17 = vld [vmem:[%s449_s1 + $0x80] sm:$0xff] }
   0x6   :  { %49 = vmatpush.msra.mxu0 %v30_v2  ;;  %119 = vmatpush.msra.mxu2 %v117_v10  ;;  %v116_v14 = vld [vmem:[%s450_s2 + $0xe8] sm:$0xff]  ;;  %v113_v16 = vld [vmem:[%s450_s2 + $0xd0] sm:$0xff]  ;;  %v114_v18 = vld [vmem:[%s450_s2 + $0xd8] sm:$0xff] }
   0x7   :  { %79 = vmatpush.msra.mxu1 %v36_v6  ;;  %v26_v15 = vld [vmem:[%s449_s1 + $0x48] sm:$0xff]  ;;  %v25_v19 = vld [vmem:[%s449_s1 + $0x40] sm:$0xff]  ;;  %140 = vmatpush.msra.mxu3 %v116_v14  ;;  %v24_v23 = vld [vmem:[%s449_s1 + $0x38] sm:$0xff] }
   0x8   :  { %50 = vmatpush.msra.mxu0 %v29_v4  ;;  %120 = vmatpush.msra.mxu2 %v115_v12  ;;  %v16_v20 = vld [vmem:[%s448_s0 + $0x8] sm:$0xff]  ;;  %v111_v21 = vld [vmem:[%s450_s2 + $0xc0] sm:$0xff]  ;;  %v109_v24 = vld [vmem:[%s450_s2 + $0xb0] sm:$0xff] }
   0x9   :  { %80 = vmatpush.msra.mxu1 %v35_v9  ;;  %v112_v22 = vld [vmem:[%s450_s2 + $0xc8] sm:$0xff]  ;;  %141 = vmatpush.msra.mxu3 %v114_v18  ;;  %v110_v25 = vld [vmem:[%s450_s2 + $0xb8] sm:$0xff]  ;;  %v23_v26 = vld [vmem:[%s449_s1 + $0x30] sm:$0xff] }
   0xa   :  { %51 = vmatpush.msra.mxu0 %v28_v7  ;;  %121 = vmatpush.msra.mxu2 %v113_v16  ;;  %v107_v27 = vld [vmem:[%s450_s2 + $0xa0] sm:$0xff]  ;;  %v108_v28 = vld [vmem:[%s450_s2 + $0xa8] sm:$0xff] }
   0xb   :  { %81 = vmatpush.msra.mxu1 %v34_v13  ;;  %142 = vmatpush.msra.mxu3 %v112_v22 }
   0xc   :  { %52 = vmatpush.msra.mxu0 %v27_v8  ;;  %122 = vmatpush.msra.mxu2 %v111_v21 }
   0xd   :  { %82 = vmatpush.msra.mxu1 %v33_v17 }
   0xe   :  { %53 = vmatpush.msra.mxu0 %v26_v15  ;;  %216 = vmatmul.msk.f32.vlgmr.msra.gmra.mxu1 %vm39_vm1, %v16_v20 }
  0x10   :  { %54 = vmatpush.msra.mxu0 %v25_v19 }
  0x12   :  { %55 = vmatpush.msra.mxu0 %v24_v23 }
  0x13   :  { %8 = vsyncpa [#allocation3], 0  ;;  %v22_v29 = vld [vmem:[%s449_s1 + $0x28] sm:$0xff]  ;;  %123 = vmatpush.msra.mxu2 %v109_v24  ;;  %143 = vmatpush.msra.mxu3 %v110_v25  ;;  %v105_v30 = vld [vmem:[%s450_s2 + $0x90] sm:$0xff]  ;;  %s206_s17 = sshll.u32 %s451_s3, 4  ;;  %s207_s17 = int_to_ptr.hbm [resolvable:$true] %s206_s17 }
  0x14   :  { %56 = vmatpush.msra.mxu0 %v23_v26  ;;  %v106_v31 = vld [vmem:[%s450_s2 + $0x98] sm:$0xff]  ;;  %v21_v32 = vld [vmem:[%s449_s1 + $0x20] sm:$0xff]  ;;  %v104_v34 = vld [vmem:[%s450_s2 + $0x88] sm:$0xff] }
  0x15   :  { %124 = vmatpush.msra.mxu2 %v107_v27  ;;  %144 = vmatpush.msra.mxu3 %v108_v28  ;;  %v103_v33 = vld [vmem:[%s450_s2 + $0x80] sm:$0xff]  ;;  %v20_v35 = vld [vmem:[%s449_s1 + $0x18] sm:$0xff]  ;;  %v101_v36 = vld [vmem:[%s450_s2 + $0x70] sm:$0xff] }
  0x16   :  { %57 = vmatpush.msra.mxu0 %v22_v29  ;;  %v102_v37 = vld [vmem:[%s450_s2 + $0x78] sm:$0xff]  ;;  %v19_v38 = vld [vmem:[%s449_s1 + $0x10] sm:$0xff]  ;;  %v99_v39 = vld [vmem:[%s450_s2 + $0x60] sm:$0xff] }
  0x17   :  { %125 = vmatpush.msra.mxu2 %v105_v30  ;;  %145 = vmatpush.msra.mxu3 %v106_v31  ;;  %v100_v40 = vld [vmem:[%s450_s2 + $0x68] sm:$0xff]  ;;  %v97_v42 = vld [vmem:[%s450_s2 + $0x50] sm:$0xff]  ;;  %v98_v43 = vld [vmem:[%s450_s2 + $0x58] sm:$0xff] }
  0x18   :  { %58 = vmatpush.msra.mxu0 %v21_v32  ;;  %v18_v41 = vld [vmem:[%s449_s1 + $0x8] sm:$0xff]  ;;  %v17_v44 = vld [vmem:[%s449_s1] sm:$0xff]  ;;  %v93_v48 = vld [vmem:[%s450_s2 + $0x30] sm:$0xff] }
  0x19   :  { %126 = vmatpush.msra.mxu2 %v103_v33  ;;  %146 = vmatpush.msra.mxu3 %v104_v34  ;;  %v15_v45 = vld [vmem:[%s448_s0] sm:$0xff]  ;;  %v96_v47 = vld [vmem:[%s450_s2 + $0x48] sm:$0xff]  ;;  %v94_v49 = vld [vmem:[%s450_s2 + $0x38] sm:$0xff] }
  0x1a   :  { %59 = vmatpush.msra.mxu0 %v20_v35  ;;  %v95_v46 = vld [vmem:[%s450_s2 + $0x40] sm:$0xff]  ;;  %v92_v51 = vld [vmem:[%s450_s2 + $0x28] sm:$0xff]  ;;  %v89_v52 = vld [vmem:[%s450_s2 + $0x10] sm:$0xff] }
  0x1b   :  { %127 = vmatpush.msra.mxu2 %v101_v36  ;;  %147 = vmatpush.msra.mxu3 %v102_v37  ;;  %v91_v50 = vld [vmem:[%s450_s2 + $0x20] sm:$0xff]  ;;  %v90_v53 = vld [vmem:[%s450_s2 + $0x18] sm:$0xff]  ;;  %v88_v55 = vld [vmem:[%s450_s2 + $0x8] sm:$0xff] }
  0x1c   :  { %60 = vmatpush.msra.mxu0 %v19_v38  ;;  %v87_v54 = vld [vmem:[%s450_s2] sm:$0xff]  ;;  %s254_s2 = smov [#allocation2]  }
  0x1d   :  { %128 = vmatpush.msra.mxu2 %v99_v39  ;;  %148 = vmatpush.msra.mxu3 %v100_v40  ;;  %s204_s14 = sshll.u32 %s254_s2, 4  ;;  %s205_s14 = int_to_ptr.vmem [resolvable:$true] %s204_s14 }
  0x1e   :  { %61 = vmatpush.msra.mxu0 %v18_v41 }
  0x1f   :  { %129 = vmatpush.msra.mxu2 %v97_v42  ;;  %149 = vmatpush.msra.mxu3 %v98_v43 }
  0x20   :  { %62 = vmatpush.msra.mxu0 %v17_v44 }
  0x21   :  { %63 = vmatmul.f32.vlgmr.msra.gmra.mxu0 %v15_v45  ;;  %130 = vmatpush.msra.mxu2 %v95_v46 }
  0x22   :  { %150 = vmatpush.msra.mxu3 %v96_v47 }
  0x23   :  { %131 = vmatpush.msra.mxu2 %v93_v48 }
  0x24   :  { %151 = vmatpush.msra.mxu3 %v94_v49 }
  0x25   :  { %132 = vmatpush.msra.mxu2 %v91_v50 }
  0x26   :  { %152 = vmatpush.msra.mxu3 %v92_v51 }
  0x27   :  { %133 = vmatpush.msra.mxu2 %v89_v52 }
  0x28   :  { %153 = vmatpush.msra.mxu3 %v90_v53 }
  0x29   :  { %134 = vmatpush.msra.mxu2 %v87_v54 }
  0x2a   :  { %154 = vmatpush.msra.mxu3 %v88_v55 }
  0x8b   :  { %v84_v56 = vpop.f32.mrf.mxu1 }
  0x9e   :  { %v64_v57 = vpop.f32.mrf.mxu0 }
  0x9f   :  { %v85_v58 = vadd.f32 %v84_v56, %v64_v57 }
  0xa1   :  { %135 = vmatmul.f32.vlgmr.msra.gmra.mxu2 %v85_v58  ;;  %155 = vmatmul.f32.vlgmr.msra.gmra.mxu3 %v85_v58 }
 0x124   :  { %v136_v59 = vpop.f32.mrf.mxu2  ;;  %v156_v60 = vpop.f32.mrf.mxu3 }
 0x125   :  { %v217_v61 = vmul.f32 -1.442695, %v136_v59  ;;  %v218_v62 = vmul.f32 -1.442695, %v156_v60 }
 0x127   :  { %220 = vpow2.f32 %v217_v61 }
 0x128   :  { %222 = vpow2.f32 %v218_v62 }
 0x12d   :  { %v221_v63 = vpop.eup %220 }
 0x12e   :  { %v223_v0 = vpop.eup %222  ;;  %v165_v1 = vadd.f32 1.0, %v221_v63 }
 0x12f   :  { %v166_v2 = vadd.f32 1.0, %v223_v0 }
 0x130   :  { %224 = vrcp.f32 %v165_v1  ;;  %v178_v9 = vand.u32 2147483648, %v165_v1  ;;  %v176_v11 = vand.u32 2147483647, %v165_v1  ;;  %vm172_vm4 = vweird.f32 %v165_v1 }
 0x131   :  { %226 = vrcp.f32 %v166_v2  ;;  %v193_v12 = vand.u32 2147483648, %v166_v2  ;;  %v191_v14 = vand.u32 2147483647, %v166_v2  ;;  %vm187_vm6 = vweird.f32 %v166_v2 }
 0x132   :  { %v179_v16 = vor.u32 1.1754944e-38, %v178_v9  ;;  %vm177_vm7 = vcmp.eq.f32.partialorder %v176_v11, 8.507059e+37 }
 0x133   :  { %v194_v19 = vor.u32 1.1754944e-38, %v193_v12  ;;  %vm192_vm9 = vcmp.eq.f32.partialorder %v191_v14, 8.507059e+37 }
 0x136   :  { %v225_v3 = vpop.eup %224 }
 0x137   :  { %v227_v4 = vpop.eup %226  ;;  %v168_v5 = vmul.f32 %v225_v3, %v165_v1  ;;  %vm173_vm2 = vweird.f32 %v225_v3 }
 0x138   :  { %v183_v6 = vmul.f32 %v227_v4, %v166_v2  ;;  %vm188_vm3 = vweird.f32 %v227_v4  ;;  %vm174_vm5 = vmor %vm172_vm4, %vm173_vm2 }
 0x139   :  { %v169_v7 = vsub.f32 1.0, %v168_v5  ;;  %vm189_vm8 = vmor %vm187_vm6, %vm188_vm3 }
 0x13a   :  { %v184_v8 = vsub.f32 1.0, %v183_v6 }
 0x13b   :  { %v170_v10 = vmul.f32 %v225_v3, %v169_v7 }
 0x13c   :  { %v185_v13 = vmul.f32 %v227_v4, %v184_v8 }
 0x13d   :  { %v171_v15 = vadd.f32 %v225_v3, %v170_v10 }
 0x13e   :  { %v186_v17 = vadd.f32 %v227_v4, %v185_v13 }
 0x13f   :  { %v175_v18 = vsel %vm174_vm5, %v225_v3, %v171_v15 }
 0x140   :  { %v180_v20 = vsel %vm177_vm7, %v179_v16, %v175_v18  ;;  %v190_v21 = vsel %vm189_vm8, %v227_v4, %v186_v17 }
 0x141   :  { %v195_v22 = vsel %vm192_vm9, %v194_v19, %v190_v21  ;;  %197 = vst [vmem:[#allocation2] sm:$0xff] %v180_v20 }
 0x142   :  { %198 = vst.msk [vmem:[#allocation2 + $0x8] sm:$0xff] %vm39_vm1, %v195_v22 }
 0x143   :  { %209 = dma.vmem_to_hbm [thread:$0]  %s205_s14, 256, %s207_s17, [#allocation3]  }
 0x144   :  { %252 = dma.done.wait [#allocation3], 256  }
 0x145   :  { %253 = vsyncadd [#allocation3], 4294967040 }
 0x146   :  { %214 = vsyncpa [#allocation3], 1 }

</bundles_post_ra>
